<compile_context>
chip_gen: v7x
topology: tpu7x:2x2x1
jax: 0.10.0
libtpu: 0.0.40
codegen_flags: <defaults>
</compile_context>

<pallas_src>
import functools

import jax
import jax.numpy as jnp
import numpy as np
from jax.experimental import pallas as pl
from jax.experimental.pallas import tpu as pltpu

D_FEAT = 16    # per-position feature dim (8 + 4 + 4)
SEQ_LEN = 9    # sequence length implied by dim2 = 86 = 16 + 2*35
OUT_W = 16     # packed output width: cols [0:S] = attention, col S = class-1 probability
X2_W = 128     # lane-aligned width of the (zero-padded) CNN feature block


def _cdiv(a, b):
    return -(-a // b)


def _round_up(a, m):
    return _cdiv(a, m) * m


# --------------------------------------------------------------------------------------
# Kernel: one grid step processes a (TB, S*D) block of flattened samples.
# --------------------------------------------------------------------------------------
def _submodel7_kernel(dims, x_ref, attpack_ref, attv_ref, wl1_ref, wl2_ref,
                      w1pack_ref, w2_ref, wdiff_ref, bias_ref, out_ref):
    S, L, n_p1 = dims["S"], dims["L"], dims["n_p1"]
    f32, bf16 = jnp.float32, jnp.bfloat16

    xb = x_ref[...]                                  # (TB, L) bf16 flattened x1

    # Static, aligned views into the packed weights (row offsets multiples of 16).
    attw = attpack_ref[0:L, :]                       # (L, L)    block-diag attention W
    rexp = attpack_ref[L:L + S, :]                   # (S, L)    repeats A over the D features
    w1m = w1pack_ref[0:L, :]                         # (L, 128)  fc1 rows hit by pooled M (tiled)
    w1x2 = w1pack_ref[L:L + X2_W, :]                 # (128,128) fc1 rows hit by CNN feats (padded)

    b_att = bias_ref[0:1, 0:L]                       # (1, L)
    cb1 = bias_ref[1:2, 0:3 * n_p1]                  # (1, 3*n_p1)
    cb2 = bias_ref[2:3, 0:X2_W]                      # (1, 128)  conv2 bias, zero-padded
    b1 = bias_ref[3:4, 0:w1pack_ref.shape[1]]        # (1, 128)
    b2 = bias_ref[4:5, 0:w2_ref.shape[1]]            # (1, 64)
    bd = bias_ref[5:6, 0:1]                          # (1, 1)    b3[1]-b3[0]

    # ---- attention: A = softmax_S( V(tanh(W x1)) ), all S positions at once ----------
    h = jnp.tanh(jnp.dot(xb, attw, preferred_element_type=f32) + b_att)        # (TB, L)
    logits = jnp.dot(h.astype(bf16), attv_ref[...], preferred_element_type=f32)  # (TB, S)
    # V's bias is identical for every position -> cancels in the softmax (exact).
    ex = jnp.exp(logits - jnp.max(logits, axis=-1, keepdims=True))
    attn = ex / jnp.sum(ex, axis=-1, keepdims=True)                            # (TB, S) f32

    # ---- attention pooling folded into fc1: (A repeated over D) * x @ tile(W1[:D]) ----
    a_rep = jnp.dot(attn.astype(bf16), rexp, preferred_element_type=f32)       # (TB, L)
    prod = (a_rep * xb.astype(f32)).astype(bf16)
    fc_m = jnp.dot(prod, w1m, preferred_element_type=f32)                      # (TB, 128)

    # ---- CNN: Conv1d(1->3,k=2)+ReLU+MaxPool(2) then Conv1d(3->2,k=2)+ReLU+MaxPool(2) --
    p1 = jnp.maximum(
        jnp.maximum(jnp.dot(xb, wl1_ref[0], preferred_element_type=f32),
                    jnp.dot(xb, wl1_ref[1], preferred_element_type=f32)) + cb1,
        0.0)                                                                   # (TB, 3*n_p1)
    # single merged even/odd GEMM; tile-aligned 128-wide halves -> max -> relu
    pair = jnp.dot(p1.astype(bf16), wl2_ref[...], preferred_element_type=f32)  # (TB, 256)
    p2 = jnp.maximum(
        jnp.maximum(pair[:, 0:X2_W], pair[:, X2_W:2 * X2_W]) + cb2, 0.0)       # (TB, 128)

    # ---- MLP head: cat([M, x2]) -> 128 -> 64 -> sigmoid(logit1 - logit0) --------------
    # TODO(synk): training-mode dropout not implemented (inference identity).
    h1 = jnp.maximum(
        fc_m + jnp.dot(p2.astype(bf16), w1x2, preferred_element_type=f32) + b1, 0.0)   # (TB,128)
    h2 = jnp.maximum(
        jnp.dot(h1.astype(bf16), w2_ref[...], preferred_element_type=f32) + b2, 0.0)   # (TB, 64)
    z = jnp.dot(h2.astype(bf16), wdiff_ref[...], preferred_element_type=f32) + bd      # (TB, 1)
    y = 1.0 / (1.0 + jnp.exp(-z))   # == softmax([l0, l1])[:, 1] exactly

    # Single packed output slab: cols [0:S] attention, col S probability, rest zero.
    tb = attn.shape[0]
    out_ref[...] = jnp.concatenate(
        [attn, y, jnp.zeros((tb, OUT_W - S - 1), f32)], axis=1)


# --------------------------------------------------------------------------------------
# Parameter folding: turn conv/pool/attention structure into MXU-friendly bf16 matrices.
# --------------------------------------------------------------------------------------
def _sel_cols(n_rows, starts):
    """(n_rows, len(starts)) 0/1 matrix with a 1 at row starts[j] of column j."""
    m = np.zeros((n_rows, len(starts)), np.float32)
    m[np.asarray(starts), np.arange(len(starts))] = 1.0
    return jnp.asarray(m)


def _pack_weights(p, S, D):
    f32, bf16 = jnp.float32, jnp.bfloat16
    L = S * D
    n_c1 = L - 1            # Conv1d(1->3, k=2) output length
    n_p1 = n_c1 // 2        # after MaxPool1d(2)
    n_c2 = n_p1 - 1         # Conv1d(3->2, k=2) output length
    n_p2 = n_c2 // 2        # after MaxPool1d(2)
    feat2 = 2 * n_p2        # flattened CNN features
    assert p["w1"].shape[0] == D + feat2, "fc1 input dim must equal D + CNN features"
    assert feat2 <= X2_W and S + 1 <= OUT_W

    eye_s = jnp.eye(S, dtype=f32)
    attw_blk = jnp.kron(eye_s, p["ww"])                                # (L, L)
    rexp = jnp.kron(eye_s, jnp.ones((1, D), f32))                      # (S, L)
    attpack = jnp.concatenate([attw_blk, rexp], axis=0)                # (L+S, L)
    attv_blk = jnp.kron(eye_s, p["vw"])                                # (L, S)

    # conv1: even/odd output positions, channels stacked along columns.
    j1 = np.arange(n_p1)
    ze0, ze1 = _sel_cols(L, 2 * j1), _sel_cols(L, 2 * j1 + 1)
    zo0, zo1 = _sel_cols(L, 2 * j1 + 1), _sel_cols(L, 2 * j1 + 2)
    c1w = p["c1w"]
    wl1e = jnp.concatenate([c1w[c, 0] * ze0 + c1w[c, 1] * ze1 for c in range(3)], axis=1)
    wl1o = jnp.concatenate([c1w[c, 0] * zo0 + c1w[c, 1] * zo1 for c in range(3)], axis=1)
    wl1 = jnp.stack([wl1e, wl1o], axis=0)                              # (2, L, 3*n_p1)

    # conv2: even/odd merged into ONE matrix, each half zero-padded to 128 lanes so the
    # in-kernel column slices are tile-aligned; columns follow torch flatten order.
    j2 = np.arange(n_p2)
    ye0, ye1 = _sel_cols(n_p1, 2 * j2), _sel_cols(n_p1, 2 * j2 + 1)
    yo0, yo1 = _sel_cols(n_p1, 2 * j2 + 1), _sel_cols(n_p1, 2 * j2 + 2)
    c2w = p["c2w"]

    def _l2(y0, y1):
        rows = []
        for ci in range(3):
            rows.append(jnp.concatenate(
                [c2w[c, ci, 0] * y0 + c2w[c, ci, 1] * y1 for c in range(2)], axis=1))
        return jnp.concatenate(rows, axis=0)                           # (3*n_p1, feat2)

    def _padcols(w):
        return jnp.pad(w, ((0, 0), (0, X2_W - feat2)))

    wl2cat = jnp.concatenate([_padcols(_l2(ye0, ye1)),
                              _padcols(_l2(yo0, yo1))], axis=1)        # (3*n_p1, 256)

    # fc1 split: rows hit by pooled M (tiled per position) / by the padded CNN features.
    w1x2 = jnp.pad(p["w1"][D:, :], ((0, X2_W - feat2), (0, 0)))        # (128, 128)
    w1pack = jnp.concatenate([jnp.tile(p["w1"][:D, :], (S, 1)), w1x2], axis=0)  # (L+128, 128)

    # 2-class softmax -> single sigmoid column (exact): y = sigmoid(h2 @ wdiff + bdiff).
    wdiff = p["w3"][:, 1:2] - p["w3"][:, 0:1]                          # (64, 1)
    bdiff = p["b3"][1] - p["b3"][0]

    # Bias rows (kept f32), zero-padded to a common width.
    widths = [L, 3 * n_p1, X2_W, p["b1"].shape[0], p["b2"].shape[0], 1]
    wmax = max(widths)

    def _row(v):
        v = jnp.asarray(v, f32).reshape(-1)
        return jnp.pad(v, (0, wmax - v.shape[0]))[None, :]

    cb2 = jnp.pad(jnp.repeat(p["c2b"], n_p2), (0, X2_W - feat2))
    biases = jnp.concatenate([
        _row(jnp.tile(p["wb"], S)),          # attention W bias, tiled per position
        _row(jnp.repeat(p["c1b"], n_p1)),    # conv1 bias per pooled column
        _row(cb2),                           # conv2 bias per pooled column (padded to 128)
        _row(p["b1"]), _row(p["b2"]), _row(bdiff),
    ], axis=0)                                                          # (6, wmax) f32
    # NOTE: attention V bias omitted on purpose: constant across positions, so
    # softmax(V h + vb) == softmax(V h) exactly.

    dims = dict(S=S, D=D, L=L, n_p1=n_p1, n_p2=n_p2, feat2=feat2)
    weights = (attpack.astype(bf16), attv_blk.astype(bf16), wl1.astype(bf16),
               wl2cat.astype(bf16), w1pack.astype(bf16), p["w2"].astype(bf16),
               wdiff.astype(bf16), biases)
    return dims, weights


# --------------------------------------------------------------------------------------
# Forward wrapper
# --------------------------------------------------------------------------------------
def submodel7_forward(seq, stat, bse, params, *, block_batch=1024):
    """Returns (y, A) == (softmax(fc(cat([M, x2])))[:, 1:2], A^T) as in subModel7."""
    f32 = jnp.float32
    x1 = jnp.concatenate([seq.astype(f32), stat.astype(f32), bse.astype(f32)], axis=2)
    B, S, D = x1.shape
    L = S * D
    # row-major flatten == torch .reshape(B, 1, -1); bf16 for the MXU (accumulate f32).
    x_flat = x1.reshape(B, L).astype(jnp.bfloat16)

    dims, weights = _pack_weights(params, S, D)

    # Batch-block sizing: clamp to the batch (no mostly-padding blocks at small B),
    # keep multiples of 16 for bf16 sublane packing, and prefer >=2 grid steps so the
    # "parallel" axis shards across both TensorCores on v7x.
    assert block_batch % 16 == 0 and block_batch > 0
    TB = max(16, min(block_batch, _round_up(B, 16)))
    n_blocks = _cdiv(B, TB)
    if n_blocks == 1 and TB >= 32:
        TB = _round_up(_cdiv(B, 2), 16)
        n_blocks = _cdiv(B, TB)
    B_pad = n_blocks * TB
    if B_pad != B:
        x_flat = jnp.pad(x_flat, ((0, B_pad - B), (0, 0)))

    def _const_spec(w):
        nd = w.ndim
        return pl.BlockSpec(w.shape, lambda i, _nd=nd: (0,) * _nd)

    grid_spec = pltpu.PrefetchScalarGridSpec(
        num_scalar_prefetch=0,
        grid=(n_blocks,),
        in_specs=[pl.BlockSpec((TB, L), lambda i: (i, 0))]
                 + [_const_spec(w) for w in weights],
        out_specs=pl.BlockSpec((TB, OUT_W), lambda i: (i, 0)),
    )

    n_p1 = dims["n_p1"]
    flops_row = 2 * (L * L + L * S + S * L + 2 * L * 3 * n_p1 + 3 * n_p1 * 2 * X2_W
                     + L * 128 + X2_W * 128 + 128 * 64 + 64 * 1)
    wbytes = sum(int(np.prod(w.shape)) * int(w.dtype.itemsize) for w in weights)
    cost = pl.CostEstimate(
        flops=int(flops_row * B_pad),
        transcendentals=int((L + S + 1) * B_pad),
        bytes_accessed=int(2 * x_flat.size + wbytes + 4 * B_pad * OUT_W),
    )

    out = pl.pallas_call(
        functools.partial(_submodel7_kernel, dims),
        grid_spec=grid_spec,
        out_shape=jax.ShapeDtypeStruct((B_pad, OUT_W), f32),
        compiler_params=pltpu.CompilerParams(
            dimension_semantics=("parallel",),
            vmem_limit_bytes=32 * 1024 * 1024,   # covers v5e's 16 MiB scoped default
        ),
        cost_estimate=cost,
    )(x_flat, *weights)

    A = out[:B, 0:S][:, None, :]       # (B, 1, S) == torch.transpose(A, 1, 2)
    y = out[:B, S:S + 1]               # (B, 1)    == softmax(fc(x))[:, 1].reshape(-1, 1)
    return y, A


# --------------------------------------------------------------------------------------
# Parameters (PyTorch-style uniform init; weights stored as (in, out) JAX layouts)
# --------------------------------------------------------------------------------------
def init_params(key):
    def u(k, shape, bound):
        return jax.random.uniform(k, shape, jnp.float32, -bound, bound)

    ks = jax.random.split(key, 14)
    b = 16 ** -0.5
    ww, wb = u(ks[0], (16, 16), b), u(ks[1], (16,), b)        # attention.W
    vw, vb = u(ks[2], (16, 1), b), u(ks[3], (1,), b)          # attention.V
    b = (1 * 2) ** -0.5
    c1w, c1b = u(ks[4], (3, 2), b), u(ks[5], (3,), b)         # Conv1d(1, 3, k=2)
    b = (3 * 2) ** -0.5
    c2w, c2b = u(ks[6], (2, 3, 2), b), u(ks[7], (2,), b)      # Conv1d(3, 2, k=2)
    b = 86 ** -0.5
    w1, b1 = u(ks[8], (86, 128), b), u(ks[9], (128,), b)      # fc[0]
    b = 128 ** -0.5
    w2, b2 = u(ks[10], (128, 64), b), u(ks[11], (64,), b)     # fc[3]
    b = 64 ** -0.5
    w3, b3 = u(ks[12], (64, 2), b), u(ks[13], (2,), b)        # fc[6]
    return dict(ww=ww, wb=wb, vw=vw, vb=vb, c1w=c1w, c1b=c1b, c2w=c2w, c2b=c2b,
                w1=w1, b1=b1, w2=w2, b2=b2, w3=w3, b3=b3)


def reference_forward(seq, stat, bse, p):
    """Plain-JAX f32 replica of subModel7.forward (inference) for validation."""
    x1 = jnp.concatenate([seq, stat, bse], axis=2).astype(jnp.float32)      # (B,S,16)
    B, S, D = x1.shape
    h = jnp.tanh(x1 @ p["ww"] + p["wb"])
    A = jax.nn.softmax(h @ p["vw"] + p["vb"], axis=1)                       # (B,S,1)
    At = jnp.transpose(A, (0, 2, 1))                                        # (B,1,S)
    M = jnp.matmul(At, x1).reshape(B, -1)                                   # (B,16)

    x = x1.reshape(B, 1, S * D)

    def conv1d(x, w, b):
        y = jax.lax.conv_general_dilated(x, w, (1,), "VALID",
                                         dimension_numbers=("NCH", "OIH", "NCH"))
        return y + b[None, :, None]

    def maxpool2(x):
        return jax.lax.reduce_window(x, -jnp.inf, jax.lax.max, (1, 1, 2), (1, 1, 2), "VALID")

    y1 = maxpool2(jax.nn.relu(conv1d(x, p["c1w"][:, None, :], p["c1b"])))
    y2 = maxpool2(jax.nn.relu(conv1d(y1, p["c2w"], p["c2b"])))
    x2 = y2.reshape(B, -1)                                                  # (B,70)

    feat = jnp.concatenate([M, x2], axis=1)                                 # (B,86)
    h1 = jax.nn.relu(feat @ p["w1"] + p["b1"])
    h2 = jax.nn.relu(h1 @ p["w2"] + p["b2"])
    probs = jax.nn.softmax(h2 @ p["w3"] + p["b3"], axis=1)
    return probs[:, 1:2], At


if __name__ == "__main__":
    B, S = 4, SEQ_LEN
    key = jax.random.PRNGKey(0)
    k_seq, k_stat, k_bse, k_par = jax.random.split(key, 4)
    seq = jax.random.normal(k_seq, (B, S, 8), jnp.float32)
    stat = jax.random.normal(k_stat, (B, S, 4), jnp.float32)
    bse = jax.random.normal(k_bse, (B, S, 4), jnp.float32)
    params = init_params(k_par)

    fwd = jax.jit(lambda a, b, c: submodel7_forward(a, b, c, params))
    y, A = fwd(seq, stat, bse)
    jax.block_until_ready((y, A))

    assert y.shape == (B, 1) and A.shape == (B, 1, S)
    assert bool(jnp.all(jnp.isfinite(y))) and bool(jnp.all(jnp.isfinite(A)))
    assert bool(jnp.allclose(jnp.sum(A, axis=2), 1.0, atol=1e-2))
    assert bool(jnp.all((y > 0.0) & (y < 1.0)))

    # Cross-check against a plain-JAX f32 reference (tighter than before: bf16 GEMMs).
    y_ref, A_ref = jax.jit(lambda a, b, c: reference_forward(a, b, c, params))(seq, stat, bse)
    assert bool(jnp.allclose(y, y_ref, atol=2e-2))
    assert bool(jnp.allclose(A, A_ref, atol=2e-2))

    print("KERNEL_OK")
</pallas_src>

<mosaic_0001>
module attributes {stable_mosaic.version = 11 : i64} {
  func.func @_submodel7_kernel(%arg0: i32, %arg1: memref<16x144xbf16, #tpu.memory_space<vmem>>, %arg2: memref<153x144xbf16, #tpu.memory_space<vmem>>, %arg3: memref<144x9xbf16, #tpu.memory_space<vmem>>, %arg4: memref<2x144x213xbf16, #tpu.memory_space<vmem>>, %arg5: memref<213x256xbf16, #tpu.memory_space<vmem>>, %arg6: memref<272x128xbf16, #tpu.memory_space<vmem>>, %arg7: memref<128x64xbf16, #tpu.memory_space<vmem>>, %arg8: memref<64x1xbf16, #tpu.memory_space<vmem>>, %arg9: memref<6x213xf32, #tpu.memory_space<vmem>>, %arg10: memref<16x16xf32, #tpu.memory_space<vmem>>) attributes {dimension_semantics = [#tpu.dimension_semantics<parallel>], iteration_bounds = array<i64: 1>, scalar_prefetch = 0 : i64, scratch_operands = 0 : i64, tpu.core_type = #tpu.core_type<tc>, window_params = [{transform_indices = @transform_0, window_bounds = array<i64: 16, 144>}, {pipeline_mode = #tpu.pipeline_mode<synchronous>, transform_indices = @transform_1, window_bounds = array<i64: 153, 144>}, {pipeline_mode = #tpu.pipeline_mode<synchronous>, transform_indices = @transform_2, window_bounds = array<i64: 144, 9>}, {pipeline_mode = #tpu.pipeline_mode<synchronous>, transform_indices = @transform_3, window_bounds = array<i64: 2, 144, 213>}, {pipeline_mode = #tpu.pipeline_mode<synchronous>, transform_indices = @transform_4, window_bounds = array<i64: 213, 256>}, {pipeline_mode = #tpu.pipeline_mode<synchronous>, transform_indices = @transform_5, window_bounds = array<i64: 272, 128>}, {pipeline_mode = #tpu.pipeline_mode<synchronous>, transform_indices = @transform_6, window_bounds = array<i64: 128, 64>}, {pipeline_mode = #tpu.pipeline_mode<synchronous>, transform_indices = @transform_7, window_bounds = array<i64: 64, 1>}, {pipeline_mode = #tpu.pipeline_mode<synchronous>, transform_indices = @transform_8, window_bounds = array<i64: 6, 213>}, {transform_indices = @transform_9, window_bounds = array<i64: 16, 16>}]} {
    %c0 = arith.constant 0 : index
    %c0_0 = arith.constant 0 : index
    %0 = vector.load %arg1[%c0, %c0_0] : memref<16x144xbf16, #tpu.memory_space<vmem>>, vector<16x144xbf16>
    %c0_1 = arith.constant 0 : index
    %c0_2 = arith.constant 0 : index
    %1 = vector.load %arg2[%c0_1, %c0_2] : memref<153x144xbf16, #tpu.memory_space<vmem>>, vector<144x144xbf16>
    %c144 = arith.constant 144 : index
    %c0_3 = arith.constant 0 : index
    %2 = vector.load %arg2[%c144, %c0_3] : memref<153x144xbf16, #tpu.memory_space<vmem>>, vector<9x144xbf16>
    %c0_4 = arith.constant 0 : index
    %c0_5 = arith.constant 0 : index
    %3 = vector.load %arg6[%c0_4, %c0_5] : memref<272x128xbf16, #tpu.memory_space<vmem>>, vector<144x128xbf16>
    %c144_6 = arith.constant 144 : index
    %c0_7 = arith.constant 0 : index
    %4 = vector.load %arg6[%c144_6, %c0_7] : memref<272x128xbf16, #tpu.memory_space<vmem>>, vector<128x128xbf16>
    %c0_8 = arith.constant 0 : index
    %c0_9 = arith.constant 0 : index
    %5 = vector.load %arg9[%c0_8, %c0_9] : memref<6x213xf32, #tpu.memory_space<vmem>>, vector<1x144xf32>
    %c1 = arith.constant 1 : index
    %c0_10 = arith.constant 0 : index
    %6 = vector.load %arg9[%c1, %c0_10] : memref<6x213xf32, #tpu.memory_space<vmem>>, vector<1x213xf32>
    %c2 = arith.constant 2 : index
    %c0_11 = arith.constant 0 : index
    %7 = vector.load %arg9[%c2, %c0_11] : memref<6x213xf32, #tpu.memory_space<vmem>>, vector<1x128xf32>
    %c3 = arith.constant 3 : index
    %c0_12 = arith.constant 0 : index
    %8 = vector.load %arg9[%c3, %c0_12] : memref<6x213xf32, #tpu.memory_space<vmem>>, vector<1x128xf32>
    %c4 = arith.constant 4 : index
    %c0_13 = arith.constant 0 : index
    %9 = vector.load %arg9[%c4, %c0_13] : memref<6x213xf32, #tpu.memory_space<vmem>>, vector<1x64xf32>
    %c5 = arith.constant 5 : index
    %c0_14 = arith.constant 0 : index
    %10 = vector.load %arg9[%c5, %c0_14] : memref<6x213xf32, #tpu.memory_space<vmem>>, vector<1x1xf32>
    %cst = arith.constant dense<0.000000e+00> : vector<16x144xf32>
    %11 = tpu.matmul %0, %1, %cst {dimension_numbers = #tpu.dot_dimension_numbers<[1], [0], [0], [1], [0, 0, 1, 1], [], []>} : vector<16x144xbf16>, vector<144x144xbf16>, vector<16x144xf32> -> vector<16x144xf32>
    %12 = vector.broadcast %5 : vector<1x144xf32> to vector<16x144xf32>
    %13 = arith.addf %11, %12 : vector<16x144xf32>
    %14 = math.tanh %13 : vector<16x144xf32>
    %15 = arith.truncf %14 : vector<16x144xf32> to vector<16x144xbf16>
    %c0_15 = arith.constant 0 : index
    %c0_16 = arith.constant 0 : index
    %16 = vector.load %arg3[%c0_15, %c0_16] : memref<144x9xbf16, #tpu.memory_space<vmem>>, vector<144x9xbf16>
    %cst_17 = arith.constant dense<0.000000e+00> : vector<16x9xf32>
    %17 = tpu.matmul %15, %16, %cst_17 {dimension_numbers = #tpu.dot_dimension_numbers<[1], [0], [0], [1], [0, 0, 1, 1], [], []>} : vector<16x144xbf16>, vector<144x9xbf16>, vector<16x9xf32> -> vector<16x9xf32>
    %cst_18 = arith.constant dense<0xFF800000> : vector<16xf32>
    %18 = vector.multi_reduction <maximumf>, %17, %cst_18 [1] : vector<16x9xf32> to vector<16xf32>
    %19 = vector.shape_cast %18 : vector<16xf32> to vector<16x1xf32>
    %20 = vector.broadcast %19 : vector<16x1xf32> to vector<16x9xf32>
    %21 = arith.subf %17, %20 : vector<16x9xf32>
    %22 = math.exp %21 : vector<16x9xf32>
    %cst_19 = arith.constant dense<0.000000e+00> : vector<16xf32>
    %23 = vector.multi_reduction <add>, %22, %cst_19 [1] : vector<16x9xf32> to vector<16xf32>
    %24 = vector.shape_cast %23 : vector<16xf32> to vector<16x1xf32>
    %25 = vector.broadcast %24 : vector<16x1xf32> to vector<16x9xf32>
    %26 = arith.divf %22, %25 : vector<16x9xf32>
    %27 = arith.truncf %26 : vector<16x9xf32> to vector<16x9xbf16>
    %cst_20 = arith.constant dense<0.000000e+00> : vector<16x144xf32>
    %28 = tpu.matmul %27, %2, %cst_20 {dimension_numbers = #tpu.dot_dimension_numbers<[1], [0], [0], [1], [0, 0, 1, 1], [], []>} : vector<16x9xbf16>, vector<9x144xbf16>, vector<16x144xf32> -> vector<16x144xf32>
    %29 = arith.extf %0 : vector<16x144xbf16> to vector<16x144xf32>
    %30 = arith.mulf %28, %29 : vector<16x144xf32>
    %31 = arith.truncf %30 : vector<16x144xf32> to vector<16x144xbf16>
    %cst_21 = arith.constant dense<0.000000e+00> : vector<16x128xf32>
    %32 = tpu.matmul %31, %3, %cst_21 {dimension_numbers = #tpu.dot_dimension_numbers<[1], [0], [0], [1], [0, 0, 1, 1], [], []>} : vector<16x144xbf16>, vector<144x128xbf16>, vector<16x128xf32> -> vector<16x128xf32>
    %c0_22 = arith.constant 0 : index
    %c0_23 = arith.constant 0 : index
    %c0_24 = arith.constant 0 : index
    %33 = vector.load %arg4[%c0_22, %c0_23, %c0_24] : memref<2x144x213xbf16, #tpu.memory_space<vmem>>, vector<1x144x213xbf16>
    %34 = vector.shape_cast %33 : vector<1x144x213xbf16> to vector<144x213xbf16>
    %cst_25 = arith.constant dense<0.000000e+00> : vector<16x213xf32>
    %35 = tpu.matmul %0, %34, %cst_25 {dimension_numbers = #tpu.dot_dimension_numbers<[1], [0], [0], [1], [0, 0, 1, 1], [], []>} : vector<16x144xbf16>, vector<144x213xbf16>, vector<16x213xf32> -> vector<16x213xf32>
    %c1_26 = arith.constant 1 : index
    %c0_27 = arith.constant 0 : index
    %c0_28 = arith.constant 0 : index
    %36 = vector.load %arg4[%c1_26, %c0_27, %c0_28] : memref<2x144x213xbf16, #tpu.memory_space<vmem>>, vector<1x144x213xbf16>
    %37 = vector.shape_cast %36 : vector<1x144x213xbf16> to vector<144x213xbf16>
    %cst_29 = arith.constant dense<0.000000e+00> : vector<16x213xf32>
    %38 = tpu.matmul %0, %37, %cst_29 {dimension_numbers = #tpu.dot_dimension_numbers<[1], [0], [0], [1], [0, 0, 1, 1], [], []>} : vector<16x144xbf16>, vector<144x213xbf16>, vector<16x213xf32> -> vector<16x213xf32>
    %39 = arith.maximumf %35, %38 : vector<16x213xf32>
    %40 = vector.broadcast %6 : vector<1x213xf32> to vector<16x213xf32>
    %41 = arith.addf %39, %40 : vector<16x213xf32>
    %cst_30 = arith.constant 0.000000e+00 : f32
    %42 = vector.broadcast %cst_30 : f32 to vector<16x213xf32>
    %43 = arith.maximumf %41, %42 : vector<16x213xf32>
    %44 = arith.truncf %43 : vector<16x213xf32> to vector<16x213xbf16>
    %c0_31 = arith.constant 0 : index
    %c0_32 = arith.constant 0 : index
    %45 = vector.load %arg5[%c0_31, %c0_32] : memref<213x256xbf16, #tpu.memory_space<vmem>>, vector<213x256xbf16>
    %cst_33 = arith.constant dense<0.000000e+00> : vector<16x256xf32>
    %46 = tpu.matmul %44, %45, %cst_33 {dimension_numbers = #tpu.dot_dimension_numbers<[1], [0], [0], [1], [0, 0, 1, 1], [], []>} : vector<16x213xbf16>, vector<213x256xbf16>, vector<16x256xf32> -> vector<16x256xf32>
    %47 = vector.extract_strided_slice %46 {offsets = [0, 0], sizes = [16, 128], strides = [1, 1]} : vector<16x256xf32> to vector<16x128xf32>
    %48 = vector.extract_strided_slice %46 {offsets = [0, 128], sizes = [16, 128], strides = [1, 1]} : vector<16x256xf32> to vector<16x128xf32>
    %49 = arith.maximumf %47, %48 : vector<16x128xf32>
    %50 = vector.broadcast %7 : vector<1x128xf32> to vector<16x128xf32>
    %51 = arith.addf %49, %50 : vector<16x128xf32>
    %cst_34 = arith.constant 0.000000e+00 : f32
    %52 = vector.broadcast %cst_34 : f32 to vector<16x128xf32>
    %53 = arith.maximumf %51, %52 : vector<16x128xf32>
    %54 = arith.truncf %53 : vector<16x128xf32> to vector<16x128xbf16>
    %cst_35 = arith.constant dense<0.000000e+00> : vector<16x128xf32>
    %55 = tpu.matmul %54, %4, %cst_35 {dimension_numbers = #tpu.dot_dimension_numbers<[1], [0], [0], [1], [0, 0, 1, 1], [], []>} : vector<16x128xbf16>, vector<128x128xbf16>, vector<16x128xf32> -> vector<16x128xf32>
    %56 = arith.addf %32, %55 : vector<16x128xf32>
    %57 = vector.broadcast %8 : vector<1x128xf32> to vector<16x128xf32>
    %58 = arith.addf %56, %57 : vector<16x128xf32>
    %cst_36 = arith.constant 0.000000e+00 : f32
    %59 = vector.broadcast %cst_36 : f32 to vector<16x128xf32>
    %60 = arith.maximumf %58, %59 : vector<16x128xf32>
    %61 = arith.truncf %60 : vector<16x128xf32> to vector<16x128xbf16>
    %c0_37 = arith.constant 0 : index
    %c0_38 = arith.constant 0 : index
    %62 = vector.load %arg7[%c0_37, %c0_38] : memref<128x64xbf16, #tpu.memory_space<vmem>>, vector<128x64xbf16>
    %cst_39 = arith.constant dense<0.000000e+00> : vector<16x64xf32>
    %63 = tpu.matmul %61, %62, %cst_39 {dimension_numbers = #tpu.dot_dimension_numbers<[1], [0], [0], [1], [0, 0, 1, 1], [], []>} : vector<16x128xbf16>, vector<128x64xbf16>, vector<16x64xf32> -> vector<16x64xf32>
    %64 = vector.broadcast %9 : vector<1x64xf32> to vector<16x64xf32>
    %65 = arith.addf %63, %64 : vector<16x64xf32>
    %cst_40 = arith.constant 0.000000e+00 : f32
    %66 = vector.broadcast %cst_40 : f32 to vector<16x64xf32>
    %67 = arith.maximumf %65, %66 : vector<16x64xf32>
    %68 = arith.truncf %67 : vector<16x64xf32> to vector<16x64xbf16>
    %c0_41 = arith.constant 0 : index
    %c0_42 = arith.constant 0 : index
    %69 = vector.load %arg8[%c0_41, %c0_42] : memref<64x1xbf16, #tpu.memory_space<vmem>>, vector<64x1xbf16>
    %cst_43 = arith.constant dense<0.000000e+00> : vector<16x1xf32>
    %70 = tpu.matmul %68, %69, %cst_43 {dimension_numbers = #tpu.dot_dimension_numbers<[1], [0], [0], [1], [0, 0, 1, 1], [], []>} : vector<16x64xbf16>, vector<64x1xbf16>, vector<16x1xf32> -> vector<16x1xf32>
    %71 = vector.broadcast %10 : vector<1x1xf32> to vector<16x1xf32>
    %72 = arith.addf %70, %71 : vector<16x1xf32>
    %cst_44 = arith.constant 0.000000e+00 : f32
    %73 = vector.broadcast %cst_44 : f32 to vector<16x1xf32>
    %74 = arith.subf %73, %72 : vector<16x1xf32>
    %75 = math.exp %74 : vector<16x1xf32>
    %cst_45 = arith.constant 1.000000e+00 : f32
    %76 = vector.broadcast %cst_45 : f32 to vector<16x1xf32>
    %77 = arith.addf %76, %75 : vector<16x1xf32>
    %cst_46 = arith.constant 1.000000e+00 : f32
    %78 = vector.broadcast %cst_46 : f32 to vector<16x1xf32>
    %79 = arith.divf %78, %77 : vector<16x1xf32>
    %cst_47 = arith.constant 0.000000e+00 : f32
    %80 = vector.broadcast %cst_47 : f32 to vector<16x6xf32>
    %81 = tpu.concatenate %26, %79, %80 in 1 : vector<16x9xf32>, vector<16x1xf32>, vector<16x6xf32> -> vector<16x16xf32>
    %c0_48 = arith.constant 0 : index
    %c0_49 = arith.constant 0 : index
    %82 = vector.load %arg10[%c0_48, %c0_49] : memref<16x16xf32, #tpu.memory_space<vmem>>, vector<16x16xf32>
    tpu.vector_store %arg10[%c0_48, %c0_49], %81 {strides = array<i32>} : memref<16x16xf32, #tpu.memory_space<vmem>>, vector<16x16xf32>,
    return
  }
  func.func @transform_0(%arg0: i32) -> (i32, i32) {
    %c0_i32 = arith.constant 0 : i32
    %c0_i32_0 = arith.constant 0 : i32
    return %arg0, %c0_i32 : i32, i32
  }
  func.func @transform_1(%arg0: i32) -> (i32, i32) {
    %c0_i32 = arith.constant 0 : i32
    %c0_i32_0 = arith.constant 0 : i32
    %c0_i32_1 = arith.constant 0 : i32
    return %c0_i32, %c0_i32_0 : i32, i32
  }
  func.func @transform_2(%arg0: i32) -> (i32, i32) {
    %c0_i32 = arith.constant 0 : i32
    %c0_i32_0 = arith.constant 0 : i32
    %c0_i32_1 = arith.constant 0 : i32
    return %c0_i32, %c0_i32_0 : i32, i32
  }
  func.func @transform_3(%arg0: i32) -> (i32, i32, i32) {
    %c0_i32 = arith.constant 0 : i32
    %c0_i32_0 = arith.constant 0 : i32
    %c0_i32_1 = arith.constant 0 : i32
    %c0_i32_2 = arith.constant 0 : i32
    return %c0_i32, %c0_i32_0, %c0_i32_1 : i32, i32, i32
  }
  func.func @transform_4(%arg0: i32) -> (i32, i32) {
    %c0_i32 = arith.constant 0 : i32
    %c0_i32_0 = arith.constant 0 : i32
    %c0_i32_1 = arith.constant 0 : i32
    return %c0_i32, %c0_i32_0 : i32, i32
  }
  func.func @transform_5(%arg0: i32) -> (i32, i32) {
    %c0_i32 = arith.constant 0 : i32
    %c0_i32_0 = arith.constant 0 : i32
    %c0_i32_1 = arith.constant 0 : i32
    return %c0_i32, %c0_i32_0 : i32, i32
  }
  func.func @transform_6(%arg0: i32) -> (i32, i32) {
    %c0_i32 = arith.constant 0 : i32
    %c0_i32_0 = arith.constant 0 : i32
    %c0_i32_1 = arith.constant 0 : i32
    return %c0_i32, %c0_i32_0 : i32, i32
  }
  func.func @transform_7(%arg0: i32) -> (i32, i32) {
    %c0_i32 = arith.constant 0 : i32
    %c0_i32_0 = arith.constant 0 : i32
    %c0_i32_1 = arith.constant 0 : i32
    return %c0_i32, %c0_i32_0 : i32, i32
  }
  func.func @transform_8(%arg0: i32) -> (i32, i32) {
    %c0_i32 = arith.constant 0 : i32
    %c0_i32_0 = arith.constant 0 : i32
    %c0_i32_1 = arith.constant 0 : i32
    return %c0_i32, %c0_i32_0 : i32, i32
  }
  func.func @transform_9(%arg0: i32) -> (i32, i32) {
    %c0_i32 = arith.constant 0 : i32
    %c0_i32_0 = arith.constant 0 : i32
    return %arg0, %c0_i32 : i32, i32
  }
}

</mosaic_0001>

<bundles_post_ra>
// kernel: _lambda_.1
= control target key start
LH: loop header
LB: loop body
LE: loop exit
PB: predicated region body
PF: predicated region fallthrough
CT: control target
= control target key end

     0   :  { %v1855_v1 = vmov 0   ;;  %vm206_vm0 = vcmask 130048   ;;  %v97_v32 = vlaneseq  ;;  %vm375_vm1 = vcmask 72704   ;;  %s2435_s1 = inlined_call_operand.vmem [shape: bf16[153,144], index: 1, kind: input, shape index: {}]   ;;  %s2436_s0 = inlined_call_operand.vmem [shape: bf16[16,144], index: 0, kind: input, shape index: {}]   ;;  %s2437_s2 = inlined_call_operand.vmem [shape: bf16[144,9], index: 2, kind: input, shape index: {}]   ;;  %s2438_s8 = inlined_call_operand.vmem [shape: f32[6,213], index: 8, kind: input, shape index: {}]   ;;  %s2439_s3 = inlined_call_operand.vmem [shape: bf16[2,144,213], index: 3, kind: input, shape index: {}]   ;;  %s2440_s4 = inlined_call_operand.vmem [shape: bf16[213,256], index: 4, kind: input, shape index: {}]   ;;  %s2441_s5 = inlined_call_operand.vmem [shape: bf16[272,128], index: 5, kind: input, shape index: {}]   ;;  %s2442_s6 = inlined_call_operand.vmem [shape: bf16[128,64], index: 6, kind: input, shape index: {}]   ;;  %s2443_s7 = inlined_call_operand.vmem [shape: bf16[64,1], index: 7, kind: input, shape index: {}]   ;;  %s2444_s9 = inlined_call_operand.vmem [shape: f32[16,16], index: 9, kind: output, shape index: {}]  }
   0x1   :  { %v1666_v0 = vld [vmem:[%s2435_s1 + $0x4] ss:$8 sps:$4 sm:$0xff]   ;;  %334 = vmatprep.subr.bf16.mxu1 %v1855_v1  ;;  %v1668_v2 = vld [vmem:[%s2435_s1] ss:$8 sps:$4 sm:$0xff]   ;;  %v1669_v3 = vld [vmem:[%s2435_s1 + $0x14] ss:$8 sps:$4 sm:$0xff]  }
   0x2   :  { %210 = vmatprep.subr.bf16.mxu0 %v1666_v0  ;;  %v1671_v4 = vld [vmem:[%s2435_s1 + $0x10] ss:$8 sps:$4 sm:$0xff]   ;;  %v1672_v5 = vld [vmem:[%s2435_s1 + $0x24] ss:$8 sps:$4 sm:$0xff]   ;;  %v1674_v6 = vld [vmem:[%s2435_s1 + $0x20] ss:$8 sps:$4 sm:$0xff]  }
   0x3   :  { %211 = vmatpush1.bf16.msra.mxu0 %v1668_v2  ;;  %v1675_v7 = vld [vmem:[%s2435_s1 + $0x34] ss:$8 sps:$4 sm:$0xff]   ;;  %v1677_v8 = vld [vmem:[%s2435_s1 + $0x30] ss:$8 sps:$4 sm:$0xff]   ;;  %v1678_v9 = vld [vmem:[%s2435_s1 + $0x44] ss:$8 sps:$4 sm:$0xff]  }
   0x4   :  { %212 = vmatprep.subr.bf16.mxu0 %v1669_v3  ;;  %v1941_v10 = vld [vmem:[%s2436_s0] sm:$0xff]  ;;  %v1946_v11 = vld [vmem:[%s2436_s0 + $0x8] sm:$0xff]  ;;  %v1681_v15 = vld [vmem:[%s2435_s1 + $0x54] ss:$8 sps:$4 sm:$0xff]   ;;  %v2022_v33 = vshrl.u32 %v97_v32, 7  ;;  %vm410_vm2 = vcmask 1043456  }
   0x5   :  { %v1950_v12 = vcombine.high %v1941_v10, %v1946_v11  ;;  %v1695_v13 = vld [vmem:[%s2437_s2] sm:$0xff]   ;;  %v1696_v16 = vld [vmem:[%s2437_s2 + $0x8] sm:$0xff]   ;;  %v1683_v17 = vld [vmem:[%s2435_s1 + $0x50] ss:$8 sps:$4 sm:$0xff]   ;;  %v1999_v26 = vcombine.low %v1941_v10, %v1946_v11  ;;  %vm411_vm3 = vcmask 1044480   ;;  %vm967_vm4 = vcmask 1041408  }
   0x6   :  { %v1680_v14 = vld [vmem:[%s2435_s1 + $0x40] ss:$8 sps:$4 sm:$0xff]   ;;  %335 = vmatpush1.bf16.msra.mxu1 %v1695_v13  ;;  %v1684_v18 = vld [vmem:[%s2435_s1 + $0x64] ss:$8 sps:$4 sm:$0xff]   ;;  %v1697_v19 = vld [vmem:[%s2437_s2 + $0x10] sm:$0xff]   ;;  %v99_v34 = vsub.s32 0, %v2022_v33 }
   0x7   :  { %213 = vmatpush1.bf16.msra.mxu0 %v1671_v4  ;;  %1456 = vmatprep.mubr.msk.bf16.mxu0 %vm206_vm0, %v1950_v12  ;;  %v1686_v20 = vld [vmem:[%s2435_s1 + $0x60] ss:$8 sps:$4 sm:$0xff]   ;;  %v1687_v21 = vld [vmem:[%s2435_s1 + $0x74] ss:$8 sps:$4 sm:$0xff]   ;;  %v1689_v23 = vld [vmem:[%s2435_s1 + $0x70] ss:$8 sps:$4 sm:$0xff]  }
   0x8   :  { %214 = vmatprep.subr.bf16.mxu0 %v1672_v5  ;;  %336 = vmatprep.subr.bf16.mxu1 %v1855_v1  ;;  %v1698_v22 = vld [vmem:[%s2437_s2 + $0x18] sm:$0xff]   ;;  %v1690_v24 = vld [vmem:[%s2435_s1 + $0x84] ss:$8 sps:$4 sm:$0xff]   ;;  %v1692_v25 = vld [vmem:[%s2435_s1 + $0x80] ss:$8 sps:$4 sm:$0xff]   ;;  %v103_v36 = vsub.s32 1, %v2022_v33 }
   0x9   :  { %v1699_v27 = vld [vmem:[%s2437_s2 + $0x20] sm:$0xff]   ;;  %v1700_v28 = vld [vmem:[%s2437_s2 + $0x28] sm:$0xff]   ;;  %v1701_v29 = vld [vmem:[%s2437_s2 + $0x30] sm:$0xff]   ;;  %vm968_vm5 = vcmask 1042432   ;;  %vm963_vm6 = vcmask 695296   ;;  %vm1858_vm7 = vmmov 0  }
   0xa   :  { %337 = vmatpush1.bf16.msra.mxu1 %v1696_v16  ;;  %v1702_v30 = vld [vmem:[%s2437_s2 + $0x38] sm:$0xff]   ;;  %v1703_v31 = vld [vmem:[%s2437_s2 + $0x40] sm:$0xff]   ;;  %vm1359_vm8 = vcmask 523264   ;;  %vm1426_vm9 = vcmask 80896  }
   0xb   :  { %215 = vmatpush1.bf16.msra.mxu0 %v1674_v6  ;;  %338 = vmatprep.subr.bf16.mxu1 %v1855_v1  ;;  %v89_v35 = vld [vmem:[%s2438_s8] ss:$8 sm:$0x3]  ;;  %v1706_v6 = vld [vmem:[%s2435_s1 + $0x94] ss:$8 sps:$4 sm:$0x1f]  }
   0xc   :  { %216 = vmatprep.subr.bf16.mxu0 %v1675_v7  ;;  %v100_v37 = vrot.slane %v89_v35, %v99_v34  ;;  %v104_v38 = vrot.slane %v89_v35, %v103_v36  ;;  %v1856_v7 = vmov 65535   ;;  %v1709_v16 = vld [vmem:[%s2439_s3 + $0x4] ss:$8 sps:$4 sm:$0xff]   ;;  %v1749_v32 = vld [vmem:[%s2439_s3 + $0x70] ss:$8 sps:$4 sm:$0xff]  }
   0xd   :  { %v1751_v35 = vld [vmem:[%s2439_s3 + $0x74] ss:$8 sps:$4 sm:$0xff]  }
   0xe   :  { %339 = vmatpush1.bf16.msra.mxu1 %v1697_v19  ;;  %v1715_v19 = vld [vmem:[%s2439_s3 + $0x14] ss:$8 sps:$4 sm:$0xff]  }
   0xf   :  { %217 = vmatpush1.bf16.msra.mxu0 %v1677_v8  ;;  %340 = vmatprep.subr.bf16.mxu1 %v1855_v1  ;;  %v412_v8 = vsel %vm410_vm2, 4294967295, %v1856_v7 }
  0x10   :  { %218 = vmatprep.subr.bf16.mxu0 %v1678_v9  ;;  %v1704_v9 = vld [vmem:[%s2435_s1 + $0x90] ss:$8 sps:$4 sm:$0x1f]   ;;  %v413_v13 = vsel %vm411_vm3, %v412_v8, 0  ;;  %v1775_v8 = vld [vmem:[%s2440_s4 + $0x44] ss:$8 sps:$4 sm:$0xff]  }
  0x12   :  { %341 = vmatpush1.bf16.msra.mxu1 %v1698_v22  ;;  %v1721_v22 = vld [vmem:[%s2439_s3 + $0x24] ss:$8 sps:$4 sm:$0xff]  }
  0x13   :  { %219 = vmatpush1.bf16.msra.mxu0 %v1680_v14  ;;  %342 = vmatprep.subr.bf16.mxu1 %v1855_v1  ;;  %v418_v14 = vand.u32 %v1706_v6, %v413_v13  ;;  %v1770_v6 = vld [vmem:[%s2440_s4 + $0x30] ss:$8 sps:$4 sm:$0xff]  }
  0x14   :  { %220 = vmatprep.subr.bf16.mxu0 %v1681_v15  ;;  %v415_v15 = vand.u32 %v1704_v9, %v413_v13  ;;  %v1778_v9 = vld [vmem:[%s2440_s4 + $0x54] ss:$8 sps:$4 sm:$0xff]   ;;  %v1776_v13 = vld [vmem:[%s2440_s4 + $0x50] ss:$8 sps:$4 sm:$0xff]  }
  0x16   :  { %343 = vmatpush1.bf16.msra.mxu1 %v1699_v27  ;;  %v1733_v27 = vld [vmem:[%s2439_s3 + $0x44] ss:$8 sps:$4 sm:$0xff]  }
  0x17   :  { %221 = vmatpush1.bf16.msra.mxu0 %v1683_v17  ;;  %344 = vmatprep.subr.bf16.mxu1 %v1855_v1  ;;  %v1707_v17 = vld [vmem:[%s2439_s3] ss:$8 sps:$4 sm:$0xff]  }
  0x18   :  { %222 = vmatprep.subr.bf16.mxu0 %v1684_v18  ;;  %v1712_v18 = vld [vmem:[%s2439_s3 + $0x94] ss:$8 sps:$4 sm:$0xff]  }
  0x1a   :  { %345 = vmatpush1.bf16.msra.mxu1 %v1700_v28  ;;  %v1737_v28 = vld [vmem:[%s2439_s3 + $0x50] ss:$8 sps:$4 sm:$0xff]  }
  0x1b   :  { %223 = vmatpush1.bf16.msra.mxu0 %v1686_v20  ;;  %346 = vmatprep.subr.bf16.mxu1 %v1855_v1  ;;  %v1713_v20 = vld [vmem:[%s2439_s3 + $0x10] ss:$8 sps:$4 sm:$0xff]  }
  0x1c   :  { %224 = vmatprep.subr.bf16.mxu0 %v1687_v21  ;;  %v1719_v21 = vld [vmem:[%s2439_s3 + $0x20] ss:$8 sps:$4 sm:$0xff]  }
  0x1e   :  { %347 = vmatpush1.bf16.msra.mxu1 %v1701_v29  ;;  %v1739_v29 = vld [vmem:[%s2439_s3 + $0x54] ss:$8 sps:$4 sm:$0xff]  }
  0x1f   :  { %225 = vmatpush1.bf16.msra.mxu0 %v1689_v23  ;;  %348 = vmatprep.subr.bf16.mxu1 %v1855_v1  ;;  %v1725_v23 = vld [vmem:[%s2439_s3 + $0x30] ss:$8 sps:$4 sm:$0xff]  }
  0x20   :  { %226 = vmatprep.subr.bf16.mxu0 %v1690_v24  ;;  %v1727_v24 = vld [vmem:[%s2439_s3 + $0x34] ss:$8 sps:$4 sm:$0xff]  }
  0x22   :  { %349 = vmatpush1.bf16.msra.mxu1 %v1702_v30  ;;  %v1743_v30 = vld [vmem:[%s2439_s3 + $0x60] ss:$8 sps:$4 sm:$0xff]  }
  0x23   :  { %227 = vmatpush1.bf16.msra.mxu0 %v1692_v25  ;;  %350 = vmatprep.subr.bf16.mxu1 %v1855_v1  ;;  %v1731_v25 = vld [vmem:[%s2439_s3 + $0x40] ss:$8 sps:$4 sm:$0xff]  }
  0x24   :  { %420 = vmatprep.subr.bf16.mxu0 %v418_v14  ;;  %v1781_v14 = vld [vmem:[%s2440_s4 + $0x64] ss:$8 sps:$4 sm:$0xff]  }
  0x26   :  { %243 = vmatmul.mubr.bf16.vlgmr.msra.gmra.mrb[0].mxu0 %v1999_v26  ;;  %351 = vmatpush1.bf16.msra.mxu1 %v1703_v31  ;;  %v1745_v31 = vld [vmem:[%s2439_s3 + $0x64] ss:$8 sps:$4 sm:$0xff]  }
  0x27   :  { %452 = vmatprep.mubr.bf16.mxu0 %v1855_v1  ;;  %421 = vmatpush1.bf16.msra.mxu0 %v415_v15  ;;  %v1779_v15 = vld [vmem:[%s2440_s4 + $0x60] ss:$8 sps:$4 sm:$0xff]  }
  0x28   :  { %581 = vmatprep.subr.bf16.mxu1 %v1709_v16  ;;  %733 = vmatprep.subr.bf16.mxu0 %v1712_v18  ;;  %v1784_v16 = vld [vmem:[%s2440_s4 + $0x74] ss:$8 sps:$4 sm:$0xff]   ;;  %v1787_v18 = vld [vmem:[%s2440_s4 + $0x84] ss:$8 sps:$4 sm:$0xff]  }
  0xf9   :  { %v244_v39 = vpop.f32.mrb[0].mxu0 }
  0xfa   :  { %v245_v40 = vadd.f32 %v244_v39, %v100_v37  ;;  %v246_v41 = vpop.f32.mrb[1].mxu0  ;;  %v1761_v39 = vld [vmem:[%s2440_s4] ss:$8 sps:$4 sm:$0xff]  }
  0xfb   :  { %v247_v42 = vadd.f32 %v246_v41, %v104_v38  ;;  %v248_v43 = vpop.f32.mrb[2].mxu0  ;;  %v1764_v41 = vld [vmem:[%s2440_s4 + $0x10] ss:$8 sps:$4 sm:$0xff]  }
  0xfc   :  { %1831 = vtanh.f32 %v245_v40  ;;  %v249_v44 = vadd.f32 %v248_v43, %v100_v37  ;;  %v250_v45 = vpop.f32.mrb[3].mxu0  ;;  %v1755_v37 = vld [vmem:[%s2439_s3 + $0x80] ss:$8 sps:$4 sm:$0xff]   ;;  %v1763_v40 = vld [vmem:[%s2440_s4 + $0x4] ss:$8 sps:$4 sm:$0xff]  }
  0xfd   :  { %1833 = vtanh.f32 %v247_v42  ;;  %v251_v46 = vadd.f32 %v250_v45, %v104_v38  ;;  %v1757_v38 = vld [vmem:[%s2439_s3 + $0x84] ss:$8 sps:$4 sm:$0xff]   ;;  %v1766_v42 = vld [vmem:[%s2440_s4 + $0x14] ss:$8 sps:$4 sm:$0xff]  }
  0xfe   :  { %1835 = vtanh.f32 %v249_v44 }
  0xff   :  { %1837 = vtanh.f32 %v251_v46 }
 0x106   :  { %v1832_v47 = vpop.eup %1831 }
 0x107   :  { %v1834_v48 = vpop.eup %1833 }
 0x108   :  { %v1836_v49 = vpop.eup %1835 }
 0x109   :  { %v1838_v50 = vpop.eup %1837  ;;  %v257_v51 = vpack.c.bf16 %v1836_v49, %v1832_v47  ;;  %v1710_v49 = vld [vmem:[%s2439_s3 + $0x90] ss:$8 sps:$4 sm:$0xff]  }
 0x10a   :  { %v258_v52 = vpack.c.bf16 %v1838_v50, %v1834_v48 }
 0x10c   :  { %1466 = vmatprep.mubr.msk.bf16.mxu1 %vm206_vm0, %v258_v52  ;;  %v1716_v52 = vld [vmem:[%s2439_s3 + $0xa0] ss:$8 sps:$4 sm:$0xff]  }
 0x10d   :  { %367 = vmatmul.mubr.bf16.vlgmr.msra.gmra.mrb[0].mxu1 %v257_v51  ;;  %v1718_v51 = vld [vmem:[%s2439_s3 + $0xa4] ss:$8 sps:$4 sm:$0xff]  }
 0x10e   :  { %1488 = vmatprep.mubr.msk.bf16.mxu1 %vm206_vm0, %v1950_v12  ;;  %582 = vmatpush1.bf16.msra.mxu1 %v1707_v17  ;;  %v1782_v17 = vld [vmem:[%s2440_s4 + $0x70] ss:$8 sps:$4 sm:$0xff]  }
 0x10f   :  { %583 = vmatprep.subr.bf16.mxu1 %v1715_v19  ;;  %v1785_v19 = vld [vmem:[%s2440_s4 + $0x80] ss:$8 sps:$4 sm:$0xff]  }
 0x112   :  { %584 = vmatpush1.bf16.msra.mxu1 %v1713_v20  ;;  %v1790_v20 = vld [vmem:[%s2440_s4 + $0x94] ss:$8 sps:$4 sm:$0xff]  }
 0x113   :  { %585 = vmatprep.subr.bf16.mxu1 %v1721_v22  ;;  %v1793_v22 = vld [vmem:[%s2440_s4 + $0xa4] ss:$8 sps:$4 sm:$0xff]  }
 0x116   :  { %586 = vmatpush1.bf16.msra.mxu1 %v1719_v21  ;;  %v1788_v21 = vld [vmem:[%s2440_s4 + $0x90] ss:$8 sps:$4 sm:$0xff]  }
 0x117   :  { %587 = vmatprep.subr.bf16.mxu1 %v1727_v24 }
 0x11a   :  { %588 = vmatpush1.bf16.msra.mxu1 %v1725_v23  ;;  %v1791_v23 = vld [vmem:[%s2440_s4 + $0xa0] ss:$8 sps:$4 sm:$0xff]  }
 0x11b   :  { %589 = vmatprep.subr.bf16.mxu1 %v1733_v27 }
 0x11e   :  { %590 = vmatpush1.bf16.msra.mxu1 %v1731_v25 }
 0x11f   :  { %591 = vmatprep.subr.bf16.mxu1 %v1739_v29  ;;  %v1796_v29 = vld [vmem:[%s2440_s4 + $0xb4] ss:$8 sps:$4 sm:$0xff]  }
 0x122   :  { %592 = vmatpush1.bf16.msra.mxu1 %v1737_v28 }
 0x123   :  { %593 = vmatprep.subr.bf16.mxu1 %v1745_v31  ;;  %v1799_v31 = vld [vmem:[%s2440_s4 + $0xc4] ss:$8 sps:$4 sm:$0xff]  }
 0x126   :  { %594 = vmatpush1.bf16.msra.mxu1 %v1743_v30  ;;  %v1794_v30 = vld [vmem:[%s2440_s4 + $0xb0] ss:$8 sps:$4 sm:$0xff]  }
 0x127   :  { %595 = vmatprep.subr.bf16.mxu1 %v1751_v35  ;;  %v827_v35 = vld [vmem:[%s2440_s4 + $0xd0] sm:$0x77] }
 0x12a   :  { %596 = vmatpush1.bf16.msra.mxu1 %v1749_v32  ;;  %v1797_v32 = vld [vmem:[%s2440_s4 + $0xc0] ss:$8 sps:$4 sm:$0xff]  }
 0x12b   :  { %597 = vmatprep.subr.bf16.mxu1 %v1757_v38  ;;  %v969_v38 = vsel %vm967_vm4, 4294967295, %v1856_v7  ;;  %v1803_v7 = vld [vmem:[%s2441_s5 + $0x50] sm:$0xff]  }
 0x12e   :  { %598 = vmatpush1.bf16.msra.mxu1 %v1755_v37  ;;  %v1553_v37 = vcombine.high %v827_v35, %v827_v35 }
 0x12f   :  { %977 = vmatprep.subr.bf16.mxu1 %v1763_v40  ;;  %v970_v40 = vsel %vm968_vm5, %v969_v38, 0 }
 0x131   :  { %614 = vmatmul.mubr.bf16.vlgmr.msra.gmra.mrb[4].mxu1 %v1999_v26 }
 0x132   :  { %978 = vmatpush1.bf16.msra.mxu1 %v1761_v39  ;;  %v1552_v39 = vcombine.low %v827_v35, %v827_v35 }
 0x133   :  { %979 = vmatprep.subr.bf16.mxu1 %v1766_v42 }
 0x134   :  { %v972_v42 = vand.u32 %v1552_v39, %v970_v40  ;;  %v1811_v39 = vld [vmem:[%s2441_s5 + $0x8] sm:$0xff]  }
 0x136   :  { %980 = vmatpush1.bf16.msra.mxu1 %v1764_v41  ;;  %v975_v41 = vand.u32 %v1553_v37, %v970_v40  ;;  %v1810_v37 = vld [vmem:[%s2441_s5] sm:$0xff]   ;;  %v1812_v40 = vld [vmem:[%s2441_s5 + $0x10] sm:$0xff]  }
 0x1e0   :  { %v368_v53 = vpop.f32.mrb[0].mxu1 }
 0x1e1   :  { %v370_v54 = vpop.f32.mrb[1].mxu1  ;;  %v376_v55 = vsel %vm375_vm1, %v368_v53, -inf }
 0x1e2   :  { %377 = vmax.xlane.f32.xlu0 %v376_v55  ;;  %v371_v56 = vpop.f32.mrb[2].mxu1  ;;  %v1722_v54 = vld [vmem:[%s2439_s3 + $0xb0] ss:$8 sps:$4 sm:$0xff]   ;;  %v1730_v55 = vld [vmem:[%s2439_s3 + $0xc4] ss:$8 sps:$4 sm:$0xff]  }
 0x1e3   :  { %v373_v57 = vpop.f32.mrb[3].mxu1  ;;  %v379_v58 = vsel %vm375_vm1, %v371_v56, -inf }
 0x1e4   :  { %v1734_v57 = vld [vmem:[%s2439_s3 + $0xd0] ss:$8 sps:$4 sm:$0xff]  }
 0x1e6   :  { %380 = vmax.xlane.f32.xlu0 %v379_v58  ;;  %v1742_v58 = vld [vmem:[%s2439_s3 + $0xe4] ss:$8 sps:$4 sm:$0xff]  }
 0x204   :  { %v2240_v24 = vpop.f32.mrb[4].mxu1 }
 0x205   :  { %v2242_v25 = vpop.f32.mrb[5].mxu1 }
 0x206   :  { %v2244_v27 = vpop.f32.mrb[6].mxu1 }
 0x207   :  { %v2246_v28 = vpop.f32.mrb[7].mxu1 }
 0x26f   :  { %v378_v59 = vpop.xlane.xlu0 %377 }
 0x270   :  { %v382_v60 = vsub.f32 %v368_v53, %v378_v59  ;;  %v1724_v53 = vld [vmem:[%s2439_s3 + $0xb4] ss:$8 sps:$4 sm:$0xff]   ;;  %v1740_v59 = vld [vmem:[%s2439_s3 + $0xe0] ss:$8 sps:$4 sm:$0xff]  }
 0x272   :  { %v384_v61 = vmul.f32 1.442695, %v382_v60  ;;  %v1748_v60 = vld [vmem:[%s2439_s3 + $0xf4] ss:$8 sps:$4 sm:$0xff]  }
 0x273   :  { %v381_v62 = vpop.xlane.xlu0 %380 }
 0x274   :  { %1839 = vpow2.f32 %v384_v61  ;;  %v383_v63 = vsub.f32 %v371_v56, %v381_v62  ;;  %v1736_v56 = vld [vmem:[%s2439_s3 + $0xd4] ss:$8 sps:$4 sm:$0xff]   ;;  %v1746_v61 = vld [vmem:[%s2439_s3 + $0xf0] ss:$8 sps:$4 sm:$0xff]   ;;  %v1754_v62 = vld [vmem:[%s2439_s3 + $0x104] ss:$8 sps:$4 sm:$0xff]  }
 0x276   :  { %v386_v0 = vmul.f32 1.442695, %v383_v63  ;;  %v1752_v63 = vld [vmem:[%s2439_s3 + $0x100] ss:$8 sps:$4 sm:$0xff]  }
 0x278   :  { %1841 = vpow2.f32 %v386_v0  ;;  %v1760_v0 = vld [vmem:[%s2439_s3 + $0x114] ss:$8 sps:$4 sm:$0xff]  }
 0x27e   :  { %v2038_v2 = vpop.eup %1839 }
 0x27f   :  { %v388_v3 = vsel %vm375_vm1, %v2038_v2, 0.0 }
 0x280   :  { %389 = vadd.xlane.f32.xlu1 %v388_v3  ;;  %v1769_v3 = vld [vmem:[%s2440_s4 + $0x24] ss:$8 sps:$4 sm:$0xff]  }
 0x281   :  { %981 = vmatprep.subr.bf16.mxu1 %v1769_v3 }
 0x282   :  { %v2042_v4 = vpop.eup %1841 }
 0x283   :  { %v391_v5 = vsel %vm375_vm1, %v2042_v4, 0.0 }
 0x284   :  { %392 = vadd.xlane.f32.xlu1 %v391_v5  ;;  %v1772_v5 = vld [vmem:[%s2440_s4 + $0x34] ss:$8 sps:$4 sm:$0xff]  }
 0x30d   :  { %v390_v43 = vpop.xlane.xlu1 %389 }
 0x30e   :  { %1843 = vrcp.f32 %v390_v43  ;;  %v1857_v43 = vmov 0.0  }
 0x311   :  { %v393_v44 = vpop.xlane.xlu1 %392 }
 0x312   :  { %1845 = vrcp.f32 %v393_v44  ;;  %v1802_v44 = vld [vmem:[%s2441_s5 + $0x48] sm:$0xff]  }
 0x318   :  { %v1844_v45 = vpop.eup %1843 }
 0x319   :  { %v2124_v47 = vmul.f32 %v1844_v45, %v2038_v2  ;;  %v1758_v2 = vld [vmem:[%s2439_s3 + $0x110] ss:$8 sps:$4 sm:$0xff]  }
 0x31a   :  { %v1804_v45 = vld [vmem:[%s2441_s5 + $0x58] sm:$0xff]  }
 0x31c   :  { %v1846_v46 = vpop.eup %1845 }
 0x31d   :  { %v2127_v48 = vmul.f32 %v1846_v46, %v2042_v4  ;;  %v1767_v4 = vld [vmem:[%s2440_s4 + $0x20] ss:$8 sps:$4 sm:$0xff]  }
 0x31e   :  { %982 = vmatpush1.bf16.msra.mxu1 %v1767_v4  ;;  %v1805_v46 = vld [vmem:[%s2441_s5 + $0x60] sm:$0xff]  }
 0x31f   :  { %v398_v50 = vpack.c.bf16 %v2127_v48, %v2124_v47  ;;  %983 = vmatprep.subr.bf16.mxu1 %v1772_v5 }
 0x321   :  { %1469 = vmatmul.mubr.msk.bf16.vlgmr.msra.gmra.mrb[4].mxu0 %vm375_vm1, %v398_v50  ;;  %v463_v50 = vunpack.c.l.bf16 %v1941_v10 }
 0x322   :  { %734 = vmatpush1.bf16.msra.mxu0 %v1710_v49  ;;  %1525 = vmatprep.mubr.msk.bf16.mxu0 %vm206_vm0, %v1950_v12  ;;  %v1728_v12 = vld [vmem:[%s2439_s3 + $0xc0] ss:$8 sps:$4 sm:$0xff]  }
 0x323   :  { %735 = vmatprep.subr.bf16.mxu0 %v1718_v51  ;;  %984 = vmatpush1.bf16.msra.mxu1 %v1770_v6  ;;  %v1806_v49 = vld [vmem:[%s2441_s5 + $0x68] sm:$0xff]   ;;  %v465_v51 = vunpack.c.l.bf16 %v1946_v11 }
 0x324   :  { %985 = vmatprep.subr.bf16.mxu1 %v1775_v8 }
 0x326   :  { %736 = vmatpush1.bf16.msra.mxu0 %v1716_v52 }
 0x327   :  { %737 = vmatprep.subr.bf16.mxu0 %v1724_v53  ;;  %v464_v53 = vunpack.c.h.bf16 %v1941_v10 }
 0x32a   :  { %738 = vmatpush1.bf16.msra.mxu0 %v1722_v54  ;;  %v466_v54 = vunpack.c.h.bf16 %v1946_v11 }
 0x32b   :  { %739 = vmatprep.subr.bf16.mxu0 %v1730_v55 }
 0x32e   :  { %740 = vmatpush1.bf16.msra.mxu0 %v1728_v12 }
 0x32f   :  { %741 = vmatprep.subr.bf16.mxu0 %v1736_v56 }
 0x332   :  { %742 = vmatpush1.bf16.msra.mxu0 %v1734_v57 }
 0x333   :  { %743 = vmatprep.subr.bf16.mxu0 %v1742_v58 }
 0x336   :  { %744 = vmatpush1.bf16.msra.mxu0 %v1740_v59 }
 0x337   :  { %745 = vmatprep.subr.bf16.mxu0 %v1748_v60 }
 0x33a   :  { %746 = vmatpush1.bf16.msra.mxu0 %v1746_v61 }
 0x33b   :  { %747 = vmatprep.subr.bf16.mxu0 %v1754_v62 }
 0x33e   :  { %748 = vmatpush1.bf16.msra.mxu0 %v1752_v63  ;;  %v1435_v63 = vld [vmem:[%s2438_s8 + $0x1] ss:$8 sm:$0x3] }
 0x33f   :  { %749 = vmatprep.subr.bf16.mxu0 %v1760_v0  ;;  %v784_v10 = vrot.slane %v1435_v63, %v99_v34  ;;  %v788_v0 = vrot.slane %v1435_v63, %v103_v36 }
 0x342   :  { %750 = vmatpush1.bf16.msra.mxu0 %v1758_v2 }
 0x343   :  { %1609 = vmatprep.subr.bf16.mxu0 %v1857_v43 }
 0x345   :  { %766 = vmatmul.mubr.bf16.vlgmr.msra.gmra.mrb[8].mxu0 %v1999_v26  ;;  %v1773_v26 = vld [vmem:[%s2440_s4 + $0x40] ss:$8 sps:$4 sm:$0xff]  }
 0x346   :  { %986 = vmatpush1.bf16.msra.mxu1 %v1773_v26  ;;  %1610 = vmatpush3.bf16.msra.mxu0 %v1802_v44  ;;  %v1815_v44 = vld [vmem:[%s2441_s5 + $0x28] sm:$0xff]  }
 0x347   :  { %987 = vmatprep.subr.bf16.mxu1 %v1778_v9  ;;  %1611 = vmatprep.subr.bf16.mxu0 %v1857_v43 }
 0x348   :  { %1625 = vmatprep.mubr.msk.bf16.mxu0 %vm1858_vm7, %v1857_v43 }
 0x34a   :  { %988 = vmatpush1.bf16.msra.mxu1 %v1776_v13  ;;  %1612 = vmatpush3.bf16.msra.mxu0 %v1803_v7  ;;  %v1816_v7 = vld [vmem:[%s2441_s5 + $0x30] sm:$0xff]  }
 0x34b   :  { %989 = vmatprep.subr.bf16.mxu1 %v1781_v14  ;;  %1613 = vmatprep.subr.bf16.mxu0 %v1857_v43 }
 0x34e   :  { %990 = vmatpush1.bf16.msra.mxu1 %v1779_v15  ;;  %1614 = vmatpush3.bf16.msra.mxu0 %v1804_v45  ;;  %v1817_v45 = vld [vmem:[%s2441_s5 + $0x38] sm:$0xff]  }
 0x34f   :  { %991 = vmatprep.subr.bf16.mxu1 %v1784_v16  ;;  %1615 = vmatprep.subr.bf16.mxu0 %v1857_v43 }
 0x352   :  { %992 = vmatpush1.bf16.msra.mxu1 %v1782_v17  ;;  %1616 = vmatpush3.bf16.msra.mxu0 %v1805_v46  ;;  %v1818_v46 = vld [vmem:[%s2441_s5 + $0x40] sm:$0xff]  }
 0x353   :  { %993 = vmatprep.subr.bf16.mxu1 %v1787_v18  ;;  %1617 = vmatprep.subr.bf16.mxu0 %v1857_v43 }
 0x356   :  { %994 = vmatpush1.bf16.msra.mxu1 %v1785_v19  ;;  %1618 = vmatpush3.bf16.msra.mxu0 %v1806_v49  ;;  %v1807_v19 = vld [vmem:[%s2441_s5 + $0x70] sm:$0xff]   ;;  %v1819_v49 = vld [vmem:[%s2442_s6] sm:$0xff]  }
 0x357   :  { %995 = vmatprep.subr.bf16.mxu1 %v1790_v20  ;;  %1619 = vmatprep.subr.bf16.mxu0 %v1857_v43  ;;  %v1808_v20 = vld [vmem:[%s2441_s5 + $0x78] sm:$0xff]  }
 0x35a   :  { %996 = vmatpush1.bf16.msra.mxu1 %v1788_v21  ;;  %1620 = vmatpush3.bf16.msra.mxu0 %v1807_v19  ;;  %v1809_v21 = vld [vmem:[%s2441_s5 + $0x80] sm:$0xff]  }
 0x35b   :  { %997 = vmatprep.subr.bf16.mxu1 %v1793_v22  ;;  %1621 = vmatprep.subr.bf16.mxu0 %v1857_v43 }
 0x35e   :  { %998 = vmatpush1.bf16.msra.mxu1 %v1791_v23  ;;  %1622 = vmatpush3.bf16.msra.mxu0 %v1808_v20  ;;  %v92_v23 = vld [vmem:[%s2438_s8 + $0x2] ss:$0 sm:$0xff] }
 0x35f   :  { %999 = vmatprep.subr.bf16.mxu1 %v1796_v29  ;;  %1623 = vmatprep.subr.bf16.mxu0 %v1857_v43 }
 0x362   :  { %1000 = vmatpush1.bf16.msra.mxu1 %v1794_v30  ;;  %1624 = vmatpush3.bf16.msra.mxu0 %v1809_v21 }
 0x363   :  { %1001 = vmatprep.subr.bf16.mxu1 %v1799_v31  ;;  %1173 = vmatprep.subr.bf16.mxu0 %v1855_v1 }
 0x366   :  { %1002 = vmatpush1.bf16.msra.mxu1 %v1797_v32 }
 0x367   :  { %1003 = vmatprep.subr.bf16.mxu1 %v975_v41  ;;  %v1813_v41 = vld [vmem:[%s2441_s5 + $0x18] sm:$0xff]  }
 0x36a   :  { %1004 = vmatpush1.bf16.msra.mxu1 %v972_v42  ;;  %v1814_v42 = vld [vmem:[%s2441_s5 + $0x20] sm:$0xff]  }
 0x36b   :  { %1629 = vmatprep.subr.bf16.mxu1 %v1857_v43 }
 0x3f4   :  { %v454_v52 = vpop.f32.mrb[4].mxu0 }
 0x3f5   :  { %v456_v55 = vpop.f32.mrb[5].mxu0  ;;  %v2290_v56 = vmul.f32 %v463_v50, %v454_v52  ;;  %v1820_v50 = vld [vmem:[%s2442_s6 + $0x8] sm:$0xff]   ;;  %v1823_v52 = vld [vmem:[%s2442_s6 + $0x20] sm:$0xff]  }
 0x3f6   :  { %v458_v12 = vpop.f32.mrb[6].mxu0  ;;  %v468_v59 = vmul.f32 %v464_v53, %v456_v55  ;;  %v1824_v53 = vld [vmem:[%s2442_s6 + $0x28] sm:$0xff]   ;;  %v1826_v55 = vld [vmem:[%s2442_s6 + $0x38] sm:$0xff]  }
 0x3f7   :  { %v2292_v57 = vmul.f32 %v465_v51, %v458_v12  ;;  %v460_v58 = vpop.f32.mrb[7].mxu0  ;;  %v1822_v51 = vld [vmem:[%s2442_s6 + $0x18] sm:$0xff]   ;;  %v1827_v12 = vld [vmem:[%s2443_s7] sm:$0xff]  }
 0x3f8   :  { %v470_v60 = vmul.f32 %v466_v54, %v460_v58  ;;  %v1825_v54 = vld [vmem:[%s2442_s6 + $0x30] sm:$0xff]  }
 0x3f9   :  { %v471_v61 = vpack.c.bf16 %v2292_v57, %v2290_v56  ;;  %v1828_v56 = vld [vmem:[%s2443_s7 + $0x8] sm:$0xff]  }
 0x3fa   :  { %v472_v62 = vpack.c.bf16 %v470_v60, %v468_v59 }
 0x418   :  { %v767_v11 = vpop.f32.mrb[8].mxu0 }
 0x419   :  { %v776_v2 = vmax.f32 %v2240_v24, %v767_v11  ;;  %v769_v3 = vpop.f32.mrb[9].mxu0 }
 0x41a   :  { %v777_v4 = vmax.f32 %v2242_v25, %v769_v3  ;;  %v771_v5 = vpop.f32.mrb[10].mxu0 }
 0x41b   :  { %v791_v6 = vadd.f32 %v784_v10, %v776_v2  ;;  %v778_v26 = vmax.f32 %v2244_v27, %v771_v5  ;;  %v773_v8 = vpop.f32.mrb[11].mxu0 }
 0x41c   :  { %v792_v9 = vadd.f32 %v788_v0, %v777_v4  ;;  %v779_v13 = vmax.f32 %v2246_v28, %v773_v8  ;;  %v1829_v8 = vld [vmem:[%s2443_s7 + $0x10] sm:$0xff]  }
 0x41d   :  { %v793_v14 = vadd.f32 %v784_v10, %v778_v26  ;;  %v795_v34 = vmax.f32 %v791_v6, 0.0 }
 0x41e   :  { %v794_v15 = vadd.f32 %v788_v0, %v779_v13  ;;  %v796_v17 = vmax.f32 %v792_v9, 0.0  ;;  %v1830_v9 = vld [vmem:[%s2443_s7 + $0x18] sm:$0xff]   ;;  %v94_v13 = vld [vmem:[%s2438_s8 + $0x4] ss:$0 sm:$0xff]  ;;  %s1859_s7 = smov 9  }
 0x41f   :  { %v797_v16 = vmax.f32 %v793_v14, 0.0 }
 0x420   :  { %v798_v33 = vmax.f32 %v794_v15, 0.0 }
 0x421   :  { %v799_v36 = vpack.c.bf16 %v797_v16, %v795_v34 }
 0x422   :  { %v800_v18 = vpack.c.bf16 %v798_v33, %v796_v17 }
 0x424   :  { %1554 = vmatprep.mubr.msk.bf16.mxu1 %vm963_vm6, %v800_v18 }
 0x425   :  { %1010 = vmatmul.mubr.bf16.vlgmr.msra.gmra.mrb[8].mxu1 %v799_v36 }
 0x426   :  { %1645 = vmatprep.mubr.msk.bf16.mxu1 %vm1858_vm7, %v1857_v43  ;;  %1630 = vmatpush3.bf16.msra.mxu1 %v1819_v49 }
 0x427   :  { %1631 = vmatprep.subr.bf16.mxu1 %v1857_v43 }
 0x42a   :  { %1632 = vmatpush3.bf16.msra.mxu1 %v1820_v50 }
 0x42b   :  { %1633 = vmatprep.subr.bf16.mxu1 %v1857_v43 }
 0x4f8   :  { %v1011_v22 = vpop.f32.mrb[8].mxu1 }
 0x4f9   :  { %v1013_v24 = vpop.f32.mrb[9].mxu1 }
 0x4fa   :  { %v1020_v25 = vmax.f32 %v1011_v22, %v1013_v24  ;;  %v1015_v27 = vpop.f32.mrb[10].mxu1 }
 0x4fb   :  { %v1017_v28 = vpop.f32.mrb[11].mxu1 }
 0x4fc   :  { %v1022_v29 = vadd.f32 %v1020_v25, %v92_v23  ;;  %v1021_v30 = vmax.f32 %v1015_v27, %v1017_v28 }
 0x4fe   :  { %v1023_v31 = vadd.f32 %v1021_v30, %v92_v23  ;;  %v1024_v32 = vmax.f32 %v1022_v29, 0.0 }
 0x500   :  { %v1025_v35 = vmax.f32 %v1023_v31, 0.0 }
 0x502   :  { %v1026_v38 = vpack.c.bf16 %v1025_v35, %v1024_v32 }
 0x504   :  { %1626 = vmatmul.mubr.bf16.vlgmr.msra.gmra.mrb[12].mxu0 %v1026_v38 }
 0x505   :  { %1174 = vmatpush1.bf16.msra.mxu0 %v1810_v37  ;;  %1572 = vmatprep.mubr.msk.bf16.mxu0 %vm206_vm0, %v472_v62 }
 0x506   :  { %1175 = vmatprep.subr.bf16.mxu0 %v1855_v1 }
 0x509   :  { %1176 = vmatpush1.bf16.msra.mxu0 %v1811_v39 }
 0x50a   :  { %1177 = vmatprep.subr.bf16.mxu0 %v1855_v1 }
 0x50d   :  { %1178 = vmatpush1.bf16.msra.mxu0 %v1812_v40 }
 0x50e   :  { %1179 = vmatprep.subr.bf16.mxu0 %v1855_v1 }
 0x511   :  { %1180 = vmatpush1.bf16.msra.mxu0 %v1813_v41 }
 0x512   :  { %1181 = vmatprep.subr.bf16.mxu0 %v1855_v1 }
 0x515   :  { %1182 = vmatpush1.bf16.msra.mxu0 %v1814_v42 }
 0x516   :  { %1183 = vmatprep.subr.bf16.mxu0 %v1855_v1 }
 0x519   :  { %1184 = vmatpush1.bf16.msra.mxu0 %v1815_v44 }
 0x51a   :  { %1185 = vmatprep.subr.bf16.mxu0 %v1855_v1 }
 0x51d   :  { %1186 = vmatpush1.bf16.msra.mxu0 %v1816_v7 }
 0x51e   :  { %1187 = vmatprep.subr.bf16.mxu0 %v1855_v1 }
 0x521   :  { %1188 = vmatpush1.bf16.msra.mxu0 %v1817_v45 }
 0x522   :  { %1189 = vmatprep.subr.bf16.mxu0 %v1855_v1  ;;  %v1821_v1 = vld [vmem:[%s2442_s6 + $0x10] sm:$0xff]  }
 0x523   :  { %1634 = vmatpush3.bf16.msra.mxu1 %v1821_v1 }
 0x524   :  { %1635 = vmatprep.subr.bf16.mxu1 %v1857_v43 }
 0x525   :  { %1190 = vmatpush1.bf16.msra.mxu0 %v1818_v46 }
 0x526   :  { %1649 = vmatprep.subr.bf16.mxu0 %v1857_v43 }
 0x527   :  { %1636 = vmatpush3.bf16.msra.mxu1 %v1822_v51 }
 0x528   :  { %1206 = vmatmul.mubr.bf16.vlgmr.msra.gmra.mrb[16].mxu0 %v471_v61  ;;  %1637 = vmatprep.subr.bf16.mxu1 %v1857_v43  ;;  %v93_v61 = vld [vmem:[%s2438_s8 + $0x3] ss:$0 sm:$0xff] }
 0x529   :  { %1657 = vmatprep.mubr.msk.bf16.mxu0 %vm1858_vm7, %v1857_v43  ;;  %1650 = vmatpush3.bf16.msra.mxu0 %v1827_v12 }
 0x52a   :  { %1651 = vmatprep.subr.bf16.mxu0 %v1857_v43 }
 0x52b   :  { %1638 = vmatpush3.bf16.msra.mxu1 %v1823_v52 }
 0x52c   :  { %1639 = vmatprep.subr.bf16.mxu1 %v1857_v43 }
 0x52d   :  { %1652 = vmatpush3.bf16.msra.mxu0 %v1828_v56 }
 0x52e   :  { %1653 = vmatprep.subr.bf16.mxu0 %v1857_v43 }
 0x52f   :  { %1640 = vmatpush3.bf16.msra.mxu1 %v1824_v53 }
 0x530   :  { %1641 = vmatprep.subr.bf16.mxu1 %v1857_v43 }
 0x531   :  { %1654 = vmatpush3.bf16.msra.mxu0 %v1829_v8 }
 0x532   :  { %1655 = vmatprep.subr.bf16.mxu0 %v1857_v43 }
 0x533   :  { %1642 = vmatpush3.bf16.msra.mxu1 %v1825_v54 }
 0x534   :  { %1643 = vmatprep.subr.bf16.mxu1 %v1857_v43  ;;  %v95_v43 = vld [vmem:[%s2438_s8 + $0x5] ss:$0 sm:$0xff] }
 0x535   :  { %1656 = vmatpush3.bf16.msra.mxu0 %v1830_v9 }
 0x537   :  { %1644 = vmatpush3.bf16.msra.mxu1 %v1826_v55 }
 0x5d7   :  { %v1109_v57 = vpop.f32.mrb[12].mxu0 }
 0x5d8   :  { %v1627_v58 = vpop.f32.mrb[13].mxu0 }
 0x5d9   :  { %v1112_v59 = vpop.f32.mrb[14].mxu0 }
 0x5da   :  { %v1628_v60 = vpop.f32.mrb[15].mxu0 }
 0x5fb   :  { %v1207_v62 = vpop.f32.mrb[16].mxu0 }
 0x5fc   :  { %v1208_v63 = vadd.f32 %v1207_v62, %v1109_v57  ;;  %v1209_v10 = vpop.f32.mrb[17].mxu0 }
 0x5fd   :  { %v1210_v11 = vpop.f32.mrb[18].mxu0 }
 0x5fe   :  { %v1214_v0 = vadd.f32 %v1208_v63, %v93_v61  ;;  %v1211_v2 = vadd.f32 %v1210_v11, %v1112_v59  ;;  %v1212_v3 = vpop.f32.mrb[19].mxu0 }
 0x600   :  { %v1215_v4 = vadd.f32 %v1211_v2, %v93_v61  ;;  %v1216_v5 = vmax.f32 %v1214_v0, 0.0 }
 0x602   :  { %v1217_v6 = vmax.f32 %v1215_v4, 0.0 }
 0x604   :  { %v1218_v26 = vpack.c.bf16 %v1217_v6, %v1216_v5 }
 0x606   :  { %1646 = vmatmul.mubr.bf16.vlgmr.msra.gmra.mrb[12].mxu1 %v1218_v26 }
 0x6d9   :  { %v1317_v14 = vpop.f32.mrb[12].mxu1 }
 0x6da   :  { %v1318_v15 = vadd.f32 %v1317_v14, %v94_v13  ;;  %v1647_v34 = vpop.f32.mrb[13].mxu1 }
 0x6db   :  { %v1320_v16 = vpop.f32.mrb[14].mxu1 }
 0x6dc   :  { %v1321_v17 = vadd.f32 %v1320_v16, %v94_v13  ;;  %v1648_v33 = vpop.f32.mrb[15].mxu1  ;;  %v1324_v36 = vmax.f32 %v1318_v15, 0.0 }
 0x6de   :  { %v1325_v18 = vmax.f32 %v1321_v17, 0.0 }
 0x6e0   :  { %v1326_v19 = vpack.c.bf16 %v1325_v18, %v1324_v36 }
 0x6e2   :  { %1658 = vmatmul.mubr.msk.bf16.vlgmr.msra.gmra.mrb[20].mxu0 %vm1359_vm8, %v1326_v19 }
 0x7b5   :  { %v1397_v20 = vpop.f32.mrb[20].mxu0 }
 0x7b6   :  { %v1398_v21 = vadd.f32 %v1397_v20, %v95_v43  ;;  %v1659_v22 = vpop.f32.mrb[21].mxu0 }
 0x7b7   :  { %v1400_v23 = vpop.f32.mrb[22].mxu0 }
 0x7b8   :  { %v1404_v24 = vsub.f32 0.0, %v1398_v21  ;;  %v1401_v25 = vadd.f32 %v1400_v23, %v95_v43  ;;  %v1660_v27 = vpop.f32.mrb[23].mxu0 }
 0x7ba   :  { %v1406_v28 = vmul.f32 1.442695, %v1404_v24  ;;  %v1405_v29 = vsub.f32 0.0, %v1401_v25 }
 0x7bc   :  { %1847 = vpow2.f32 %v1406_v28  ;;  %v1408_v30 = vmul.f32 1.442695, %v1405_v29 }
 0x7be   :  { %1849 = vpow2.f32 %v1408_v30 }
 0x7c6   :  { %v1848_v31 = vpop.eup %1847 }
 0x7c7   :  { %v1410_v32 = vadd.f32 1.0, %v1848_v31 }
 0x7c8   :  { %v1850_v35 = vpop.eup %1849 }
 0x7c9   :  { %1851 = vrcp.f32 %v1410_v32  ;;  %v1411_v37 = vadd.f32 1.0, %v1850_v35 }
 0x7cb   :  { %1853 = vrcp.f32 %v1411_v37 }
 0x7d3   :  { %v1852_v38 = vpop.eup %1851 }
 0x7d4   :  { %1418 = vrot.lane.b32.xlu0 %v1852_v38, %s1859_s7 }
 0x7d5   :  { %v1854_v39 = vpop.eup %1853 }
 0x7d6   :  { %1420 = vrot.lane.b32.xlu1 %v1854_v39, %s1859_s7 }
 0x846   :  { %v1419_v40 = vpop.permute.xlu0 %1418 }
 0x847   :  { %v1424_v41 = vsel %vm375_vm1, %v2124_v47, %v1419_v40 }
 0x848   :  { %v1427_v42 = vsel %vm1426_vm9, %v1424_v41, 0.0  ;;  %v1421_v44 = vpop.permute.xlu1 %1420 }
 0x849   :  { %1429 = vst.msk [vmem:[%s2444_s9] sm:$0xff] %vm206_vm0, %v1427_v42  ;;  %v1425_v7 = vsel %vm375_vm1, %v2127_v48, %v1421_v44 }
 0x84a   :  { %v1428_v45 = vsel %vm1426_vm9, %v1425_v7, 0.0 }
 0x84b   :  { %1430 = vst.msk [vmem:[%s2444_s9 + $0x8] sm:$0xff] %vm206_vm0, %v1428_v45 }

</bundles_post_ra>
